<compile_context>
chip_gen: v6e
topology: v6e:2x2x1
jax: 0.10.0
libtpu: 0.0.40
codegen_flags: <defaults>
</compile_context>

<pallas_src>
import math
import functools

import jax
import jax.numpy as jnp
from jax.experimental import pallas as pl
from jax.experimental.pallas import tpu as pltpu

LRELU_SLOPE = 0.1  # modules.LRELU_SLOPE in vits


# ----------------------------- Pallas kernel ---------------------------------

def _gconv_kernel(p_ref, w_ref, b_ref, o_ref, *, gt, cs, neg_slope):
    """One (channel_tile, batch, time_tile) block of a grouped Conv1d-as-GEMM.

    p_ref: (g_block, T_tile, Kc)   im2col patches (one row per output time step)
    w_ref: (Kc, C_TILE)            lane-dense packed weight tile
    b_ref: (1, C_TILE)             bias tile
    o_ref: (T_tile, C_TILE)        lane-dense output tile (channels-last)
    """
    w_all = w_ref[...]
    if gt == 1:
        acc = jnp.dot(p_ref[0], w_all, preferred_element_type=jnp.float32)
    else:
        outs = []
        for g in range(gt):
            outs.append(
                jnp.dot(
                    p_ref[g],
                    w_all[:, g * cs:(g + 1) * cs],
                    preferred_element_type=jnp.float32,
                )
            )
        acc = jnp.concatenate(outs, axis=-1)
    acc = acc + b_ref[...]
    if neg_slope is not None:
        acc = jnp.where(acc >= 0.0, acc, neg_slope * acc)
    o_ref[...] = acc.astype(o_ref.dtype)


def _vreg_padded_bytes(shape, dtype_bytes=4):
    """Rough VMEM footprint of a block (last dim -> 128 lanes, 2nd-last -> 8 sublanes)."""
    s = list(shape)
    s[-1] = -(-s[-1] // 128) * 128
    if len(s) >= 2:
        s[-2] = -(-s[-2] // 8) * 8
    return math.prod(s) * dtype_bytes


# ------------------------------- wrapper --------------------------------------

def conv1d_pallas(x_tc, w, b, *, stride, padding, groups, neg_slope=None):
    """Grouped Conv1d matching torch.nn.Conv1d semantics (+ optional leaky-relu).

    x_tc: (B, T, Cin)  float32 channels-last activation.
    w:    (Cout, Cin // groups, K)  (PyTorch weight layout)
    b:    (Cout,)
    returns (B, T_out, Cout) channels-last.
    """
    B, T, Cin = x_tc.shape
    Cout, Cin_pg, K = w.shape
    G = groups
    assert Cin_pg == Cin // G and Cout % G == 0
    Cout_pg = Cout // G
    Kc = K * Cin_pg
    T_out = (T + 2 * padding - K) // stride + 1
    assert T_out >= 1

    # ---- output-channel tiling (lane-dense tiles of up to 128 channels) ----
    C_TILE = min(128, Cout)
    assert Cout % C_TILE == 0
    NCT = Cout // C_TILE
    if Cout_pg >= C_TILE:
        # Dense layer (or small Cout): slice Cout within the single group.
        assert G == 1, "per-group channel slicing only supported for groups=1"
        GT, CS = 1, C_TILE
        shared_patches = True           # all channel tiles reuse the same patches
    else:
        # Grouped layer: pack GT whole groups per 128-lane output tile.
        assert C_TILE % Cout_pg == 0
        GT, CS = C_TILE // Cout_pg, Cout_pg
        assert G % GT == 0 and G // GT == NCT
        shared_patches = False
    g_block = 1 if shared_patches else GT

    # ---- time tiling ----
    if T_out > 256:
        T_TILE = 256
        n_tt = pl.cdiv(T_out, T_TILE)
    else:
        T_TILE = T_out
        n_tt = 1
    T_out_p = n_tt * T_TILE

    # ---- glue: im2col (folds the K taps + Cin_pg into one contraction) ----
    T_need = stride * (T_out_p - 1) + K
    pad_hi = max(T_need - (T + padding), 0)
    x_p = jnp.pad(x_tc, ((0, 0), (padding, pad_hi), (0, 0)))
    # K shifted (strided) slices -> (B, T_out_p, K, Cin); stride handled here,
    # so the kernel only issues contiguous dense loads.
    win = jnp.stack(
        [x_p[:, k:k + stride * T_out_p:stride, :] for k in range(K)], axis=2
    )
    patches = (
        win.reshape(B, T_out_p, K, G, Cin_pg)
        .transpose(0, 3, 1, 2, 4)
        .reshape(B, G, T_out_p, Kc)
    )

    # ---- glue: pack weights into lane-dense (NCT, Kc, C_TILE) tiles ----
    # wg[g, k*Cin_pg + ci, c] = w[g*Cout_pg + c, ci, k]
    wg = (
        w.reshape(G, Cout_pg, Cin_pg, K)
        .transpose(0, 3, 2, 1)
        .reshape(G, Kc, Cout_pg)
    )
    if shared_patches:
        pw = wg[0].reshape(Kc, NCT, C_TILE).transpose(1, 0, 2)
    else:
        pw = (
            wg.reshape(NCT, GT, Kc, Cout_pg)
            .transpose(0, 2, 1, 3)
            .reshape(NCT, Kc, C_TILE)
        )
    pb = b.reshape(NCT, 1, C_TILE)

    # ---- VMEM budget derived from block sizes (cap for v7x's 64 MiB VMEM) ----
    blk_bytes = (
        _vreg_padded_bytes((g_block, T_TILE, Kc))
        + _vreg_padded_bytes((Kc, C_TILE))
        + _vreg_padded_bytes((1, C_TILE))
        + _vreg_padded_bytes((T_TILE, C_TILE))
    )
    vmem_limit = int(min(48 * 2**20, max(4 * blk_bytes + (4 << 20), 16 << 20)))

    kernel = functools.partial(_gconv_kernel, gt=GT, cs=CS, neg_slope=neg_slope)

    if shared_patches:
        patch_idx = lambda ct, bb, tt: (bb, 0, tt, 0)
    else:
        patch_idx = lambda ct, bb, tt: (bb, ct, tt, 0)

    out = pl.pallas_call(
        kernel,
        out_shape=jax.ShapeDtypeStruct((B, T_out_p, Cout), jnp.float32),
        # channel-tile outermost, batch/time inner: weight & bias block indices
        # stay constant across consecutive steps -> no per-batch weight re-DMA.
        grid=(NCT, B, n_tt),
        in_specs=[
            pl.BlockSpec((None, g_block, T_TILE, Kc), patch_idx),
            pl.BlockSpec((None, Kc, C_TILE), lambda ct, bb, tt: (ct, 0, 0)),
            pl.BlockSpec((None, 1, C_TILE), lambda ct, bb, tt: (ct, 0, 0)),
        ],
        out_specs=pl.BlockSpec(
            (None, T_TILE, C_TILE), lambda ct, bb, tt: (bb, tt, ct)
        ),
        compiler_params=pltpu.CompilerParams(
            dimension_semantics=("parallel", "parallel", "parallel"),
            vmem_limit_bytes=vmem_limit,
        ),
    )(patches, pw, pb)

    if T_out_p != T_out:
        out = out[:, :T_out, :]
    return out


# ----------------------------- parameters ------------------------------------

_CONV_CONFIGS = [
    # (Cin, Cout, K, stride, groups, padding)
    (1,    16,   15, 1, 1,   7),
    (16,   64,   41, 4, 4,   20),
    (64,   256,  41, 4, 16,  20),
    (256,  1024, 41, 4, 64,  20),
    (1024, 1024, 41, 4, 256, 20),
    (1024, 1024, 5,  1, 1,   2),
]
_CONV_POST = (1024, 1, 3, 1, 1, 1)


def init_params(key):
    """Deterministic Conv1d params (PyTorch default kaiming-uniform-style bounds).

    weight_norm / spectral_norm only reparameterize the weight; the effective
    forward weight is initialized directly here.
    """
    params = []
    for (cin, cout, k, s, g, p) in _CONV_CONFIGS + [_CONV_POST]:
        key, wk, bk = jax.random.split(key, 3)
        fan_in = (cin // g) * k
        bound = 1.0 / math.sqrt(fan_in)
        w = jax.random.uniform(wk, (cout, cin // g, k), jnp.float32, -bound, bound)
        b = jax.random.uniform(bk, (cout,), jnp.float32, -bound, bound)
        params.append((w, b, s, g, p))
    return params


# ----------------------------- forward passes --------------------------------

def discriminator_s_pallas(x_nct, params):
    """x_nct: (B, 1, T) in PyTorch NCT layout. Returns (flattened, fmap list in NCT)."""
    fmap = []
    x = jnp.transpose(x_nct, (0, 2, 1))  # channels-last chain inside the kernels
    for (w, b, s, g, p) in params[:-1]:
        x = conv1d_pallas(x, w, b, stride=s, padding=p, groups=g,
                          neg_slope=LRELU_SLOPE)
        fmap.append(jnp.transpose(x, (0, 2, 1)))      # NCT for the feature maps
    w, b, s, g, p = params[-1]
    x = conv1d_pallas(x, w, b, stride=s, padding=p, groups=g, neg_slope=None)
    fmap.append(jnp.transpose(x, (0, 2, 1)))
    x_flat = x.reshape(x.shape[0], -1)                # == torch.flatten(x, 1, -1)
    return x_flat, fmap


def _conv1d_ref(x, w, b, *, stride, padding, groups):
    y = jax.lax.conv_general_dilated(
        x, w,
        window_strides=(stride,),
        padding=[(padding, padding)],
        dimension_numbers=("NCH", "OIH", "NCH"),
        feature_group_count=groups,
        precision=jax.lax.Precision.HIGHEST,
    )
    return y + b[None, :, None]


def discriminator_s_ref(x, params):
    fmap = []
    for (w, b, s, g, p) in params[:-1]:
        x = _conv1d_ref(x, w, b, stride=s, padding=p, groups=g)
        x = jnp.where(x >= 0.0, x, LRELU_SLOPE * x)
        fmap.append(x)
    w, b, s, g, p = params[-1]
    x = _conv1d_ref(x, w, b, stride=s, padding=p, groups=g)
    fmap.append(x)
    return x.reshape(x.shape[0], -1), fmap


# ----------------------------------- main -------------------------------------

if __name__ == "__main__":
    key = jax.random.PRNGKey(0)
    key, xk, pk = jax.random.split(key, 3)

    B, T = 2, 64
    x = jax.random.normal(xk, (B, 1, T), jnp.float32)   # (batch, channels=1, time)
    params = init_params(pk)

    out, fmap = discriminator_s_pallas(x, params)
    out = jax.block_until_ready(out)
    fmap = [jax.block_until_ready(f) for f in fmap]

    # correctness check against a pure-JAX reference
    ref_out, ref_fmap = discriminator_s_ref(x, params)
    assert out.shape == ref_out.shape
    assert jnp.allclose(out, ref_out, atol=1e-3, rtol=1e-2), "final output mismatch"
    assert len(fmap) == len(ref_fmap) == 7
    for a, r in zip(fmap, ref_fmap):
        assert a.shape == r.shape
        assert jnp.allclose(a, r, atol=1e-3, rtol=1e-2), "fmap mismatch"

    print("KERNEL_OK")
</pallas_src>

<mosaic_0001>
module attributes {stable_mosaic.version = 11 : i64} {
  func.func @_gconv_kernel(%arg0: i32, %arg1: i32, %arg2: i32, %arg3: memref<1x1x64x15xf32, #tpu.memory_space<vmem>>, %arg4: memref<1x15x16xf32, #tpu.memory_space<vmem>>, %arg5: memref<1x1x16xf32, #tpu.memory_space<vmem>>, %arg6: memref<1x64x16xf32, #tpu.memory_space<vmem>>) attributes {dimension_semantics = [#tpu.dimension_semantics<parallel>, #tpu.dimension_semantics<parallel>, #tpu.dimension_semantics<parallel>], iteration_bounds = array<i64: 1, 2, 1>, scalar_prefetch = 0 : i64, scratch_operands = 0 : i64, tpu.core_type = #tpu.core_type<tc>, window_params = [{transform_indices = @transform_0, window_bounds = array<i64: 1, 1, 64, 15>}, {transform_indices = @transform_1, window_bounds = array<i64: 1, 15, 16>}, {transform_indices = @transform_2, window_bounds = array<i64: 1, 1, 16>}, {transform_indices = @transform_3, window_bounds = array<i64: 1, 64, 16>}]} {
    %c0 = arith.constant 0 : index
    %c0_0 = arith.constant 0 : index
    %c0_1 = arith.constant 0 : index
    %0 = vector.load %arg4[%c0, %c0_0, %c0_1] : memref<1x15x16xf32, #tpu.memory_space<vmem>>, vector<1x15x16xf32>
    %1 = vector.shape_cast %0 : vector<1x15x16xf32> to vector<15x16xf32>
    %c0_2 = arith.constant 0 : index
    %c0_3 = arith.constant 0 : index
    %c0_4 = arith.constant 0 : index
    %c0_5 = arith.constant 0 : index
    %2 = vector.load %arg3[%c0_2, %c0_3, %c0_4, %c0_5] : memref<1x1x64x15xf32, #tpu.memory_space<vmem>>, vector<1x1x64x15xf32>
    %3 = vector.shape_cast %2 : vector<1x1x64x15xf32> to vector<64x15xf32>
    %cst = arith.constant dense<0.000000e+00> : vector<64x16xf32>
    %4 = tpu.matmul %3, %1, %cst {dimension_numbers = #tpu.dot_dimension_numbers<[1], [0], [0], [1], [0, 0, 1, 1], [], []>} : vector<64x15xf32>, vector<15x16xf32>, vector<64x16xf32> -> vector<64x16xf32>
    %c0_6 = arith.constant 0 : index
    %c0_7 = arith.constant 0 : index
    %c0_8 = arith.constant 0 : index
    %5 = vector.load %arg5[%c0_6, %c0_7, %c0_8] : memref<1x1x16xf32, #tpu.memory_space<vmem>>, vector<1x1x16xf32>
    %6 = vector.shape_cast %5 : vector<1x1x16xf32> to vector<1x16xf32>
    %7 = vector.broadcast %6 : vector<1x16xf32> to vector<64x16xf32>
    %8 = arith.addf %4, %7 : vector<64x16xf32>
    %cst_9 = arith.constant 0.000000e+00 : f32
    %9 = vector.broadcast %cst_9 : f32 to vector<64x16xf32>
    %10 = arith.cmpf oge, %8, %9 : vector<64x16xf32>
    %cst_10 = arith.constant 1.000000e-01 : f32
    %11 = vector.broadcast %cst_10 : f32 to vector<64x16xf32>
    %12 = arith.mulf %11, %8 : vector<64x16xf32>
    %13 = arith.select %10, %8, %12 : vector<64x16xi1>, vector<64x16xf32>
    %c0_11 = arith.constant 0 : index
    %c0_12 = arith.constant 0 : index
    %c0_13 = arith.constant 0 : index
    %14 = vector.load %arg6[%c0_11, %c0_12, %c0_13] : memref<1x64x16xf32, #tpu.memory_space<vmem>>, vector<1x64x16xf32>
    %15 = vector.shape_cast %14 : vector<1x64x16xf32> to vector<64x16xf32>
    %16 = vector.shape_cast %13 : vector<64x16xf32> to vector<1x64x16xf32>
    tpu.vector_store %arg6[%c0_11, %c0_12, %c0_13], %16 {strides = array<i32>} : memref<1x64x16xf32, #tpu.memory_space<vmem>>, vector<1x64x16xf32>,
    return
  }
  func.func @transform_0(%arg0: i32, %arg1: i32, %arg2: i32) -> (i32, i32, i32, i32) {
    %c0_i32 = arith.constant 0 : i32
    %c0_i32_0 = arith.constant 0 : i32
    %c0_i32_1 = arith.constant 0 : i32
    return %arg1, %c0_i32, %arg2, %c0_i32_0 : i32, i32, i32, i32
  }
  func.func @transform_1(%arg0: i32, %arg1: i32, %arg2: i32) -> (i32, i32, i32) {
    %c0_i32 = arith.constant 0 : i32
    %c0_i32_0 = arith.constant 0 : i32
    %c0_i32_1 = arith.constant 0 : i32
    return %arg0, %c0_i32, %c0_i32_0 : i32, i32, i32
  }
  func.func @transform_2(%arg0: i32, %arg1: i32, %arg2: i32) -> (i32, i32, i32) {
    %c0_i32 = arith.constant 0 : i32
    %c0_i32_0 = arith.constant 0 : i32
    %c0_i32_1 = arith.constant 0 : i32
    return %arg0, %c0_i32, %c0_i32_0 : i32, i32, i32
  }
  func.func @transform_3(%arg0: i32, %arg1: i32, %arg2: i32) -> (i32, i32, i32) {
    %c0_i32 = arith.constant 0 : i32
    return %arg1, %arg2, %arg0 : i32, i32, i32
  }
}

</mosaic_0001>

<bundles_post_ra>
// kernel: tpu_custom_call.1
= control target key start
LH: loop header
LB: loop body
LE: loop exit
PB: predicated region body
PF: predicated region fallthrough
CT: control target
= control target key end

     0   :  { %s693_s12 = smov 0   ;;  %s695_s13 = smov 0   ;;  %s764_s0 = inlined_call_operand.vmem [shape: f32[2,1,64,15], index: 0, kind: input, shape index: {}]   ;;  %s765_s1 = inlined_call_operand.vmem [shape: f32[1,15,16], index: 1, kind: input, shape index: {}]   ;;  %s766_s2 = inlined_call_operand.vmem [shape: f32[1,1,16], index: 2, kind: input, shape index: {}]   ;;  %s767_s3 = inlined_call_operand.vmem [shape: f32[2,64,16], index: 3, kind: output, shape index: {}]  }
   0x1   :  { %s697_s14 = smov 0  }
   0x2 LB: > { %s28_s15 = sadd.s32 1, %s667_s13  ;;  %p576_p0 = scmp.ge.s32.totalorder %s671_s14, 1  ;;  %s671_s14 = sphi %s697_s14, %s13_s14   ;;  %s667_s13 = sphi %s695_s13, %s769_s13   ;;  %s663_s12 = sphi %s693_s12, %s768_s12  }
   0x3   : > { %p30_p1 = scmp.ge.s32.totalorder %s28_s15, 2  ;;  %p185_p2 = scmp.lt.s32.totalorder %s671_s14, 3 }
   0x5   : > { %s771_s15 = smov (%p30_p1, %s28_s15), 0  ;;  %p186_p3 = pnand %p576_p0, %p185_p2 }
   0x6   : > { %p229_p4 = scmp.lt.s32.totalorder (!%p186_p3), %s663_s12, 1 }
   0x7   : > { %189 = sbr.rel (%p186_p3) target bundleno = 225 (0xe1), region = 32 }
   0xc   : > { %v260_v0 = vld [vmem:[%s765_s1 + $0x8] sm:$0x7f]  ;;  %vm301_vm0 = vcmask 1046528   ;;  %v259_v1 = vld [vmem:[%s765_s1] sm:$0xff]  ;;  %s773_s12 = smov (!%p229_p4, %s663_s12), 1  ;;  %vm276_vm1 = vcmask 121856  }
   0xd   : > { %605 = vmatprep.subr.msk.mxu0 %vm301_vm0, %v260_v0  ;;  %621 = vmatprep.subr.msk.mxu1 %vm301_vm0, %v260_v0  ;;  %s593_s20 = sshll.u32 %s773_s12, 6  ;;  %v581_v10 = vld [vmem:[%s766_s2] ss:$0 sm:$0xff]  ;;  %vm434_vm2 = vcmask 130048  }
   0xe   : > { %606 = vmatpush3.msk.msra.mxu0 %vm301_vm0, %v260_v0  ;;  %623 = vmatpush3.msk.msra.mxu1 %vm301_vm0, %v260_v0  ;;  %s236_s23 = scalar_lea.vmem %s764_s0, %s593_s20  ;;  %s737_s28 = scalar_lea.vmem %s767_s3, %s593_s20 }
   0xf   : > { %607 = vmatprep.subr.mxu0 %v259_v1  ;;  %622 = vmatprep.subr.mxu1 %v259_v1  ;;  %v261_v2 = vld [vmem:[%s236_s23] sm:$0xff]  ;;  %v262_v4 = vld [vmem:[%s236_s23 + $0x8] sm:$0xff]  ;;  %v263_v6 = vld [vmem:[%s236_s23 + $0x10] sm:$0xff] }
  0x10   : > { %608 = vmatpush3.msra.mxu0 %v259_v1  ;;  %624 = vmatpush3.msra.mxu1 %v259_v1  ;;  %v265_v3 = vld [vmem:[%s236_s23 + $0x20] sm:$0xff]  ;;  %v266_v5 = vld [vmem:[%s236_s23 + $0x28] sm:$0xff]  ;;  %v267_v7 = vld [vmem:[%s236_s23 + $0x30] sm:$0xff] }
  0x11   : > { %609 = vmatprep.mubr.msk.f32.mxu0 %vm276_vm1, %v261_v2  ;;  %615 = vmatprep.mubr.msk.f32.mxu1 %vm276_vm1, %v265_v3  ;;  %v264_v8 = vld [vmem:[%s236_s23 + $0x18] sm:$0xff] }
  0x12   : > { %610 = vmatmul.mubr.msk.f32.vlgmr.msra.gmra.mxu0 %vm276_vm1, %v262_v4  ;;  %616 = vmatmul.mubr.msk.f32.vlgmr.msra.gmra.mxu1 %vm276_vm1, %v266_v5  ;;  %v268_v9 = vld [vmem:[%s236_s23 + $0x38] sm:$0xff] }
  0x13   : > { %612 = vmatprep.mubr.msk.f32.mxu0 %vm276_vm1, %v263_v6  ;;  %618 = vmatprep.mubr.msk.f32.mxu1 %vm276_vm1, %v267_v7 }
  0x16   : > { %613 = vmatmul.mubr.msk.f32.gmra.mxu0 %vm276_vm1, %v264_v8  ;;  %619 = vmatmul.mubr.msk.f32.gmra.mxu1 %vm276_vm1, %v268_v9 }
  0xd2   : > { %v611_v11 = vpop.f32.mrf.mxu0  ;;  %v617_v12 = vpop.f32.mrf.mxu1 }
  0xd3   : > { %v377_v13 = vadd.f32 %v611_v11, %v581_v10  ;;  %v397_v14 = vadd.f32 %v617_v12, %v581_v10 }
  0xd4   : > { %v371_v15 = vpop.f32.mrf.mxu0  ;;  %v391_v16 = vpop.f32.mrf.mxu1 }
  0xd5   : > { %vm411_vm3 = vcmp.ge.f32.partialorder %v377_v13, 0.0  ;;  %v419_v17 = vmul.f32 0.1, %v377_v13  ;;  %vm415_vm4 = vcmp.ge.f32.partialorder %v397_v14, 0.0  ;;  %v423_v18 = vmul.f32 0.1, %v397_v14 }
  0xd6   : > { %v372_v19 = vadd.f32 %v581_v10, %v371_v15  ;;  %v392_v20 = vadd.f32 %v581_v10, %v391_v16  ;;  %v614_v21 = vpop.f32.mrf.mxu0  ;;  %v620_v22 = vpop.f32.mrf.mxu1 }
  0xd7   : > { %v427_v23 = vsel %vm411_vm3, %v377_v13, %v419_v17  ;;  %v431_v24 = vsel %vm415_vm4, %v397_v14, %v423_v18  ;;  %v387_v25 = vadd.f32 %v614_v21, %v581_v10  ;;  %v407_v26 = vadd.f32 %v620_v22, %v581_v10 }
  0xd8   : > { %436 = vst.msk [vmem:[%s737_s28 + $0x8] sm:$0xff] %vm434_vm2, %v427_v23  ;;  %440 = vst.msk [vmem:[%s737_s28 + $0x28] sm:$0xff] %vm434_vm2, %v431_v24  ;;  %vm410_vm5 = vcmp.ge.f32.partialorder %v372_v19, 0.0  ;;  %v418_v27 = vmul.f32 0.1, %v372_v19  ;;  %vm414_vm6 = vcmp.ge.f32.partialorder %v392_v20, 0.0  ;;  %v381_v29 = vpop.f32.mrf.mxu0  ;;  %v401_v30 = vpop.f32.mrf.mxu1 }
  0xd9   : > { %v422_v28 = vmul.f32 0.1, %v392_v20  ;;  %vm413_vm7 = vcmp.ge.f32.partialorder %v387_v25, 0.0  ;;  %v421_v31 = vmul.f32 0.1, %v387_v25  ;;  %vm417_vm8 = vcmp.ge.f32.partialorder %v407_v26, 0.0 }
  0xda   : > { %v425_v32 = vmul.f32 0.1, %v407_v26  ;;  %v426_v33 = vsel %vm410_vm5, %v372_v19, %v418_v27  ;;  %v382_v35 = vadd.f32 %v581_v10, %v381_v29  ;;  %v402_v36 = vadd.f32 %v581_v10, %v401_v30 }
  0xdb   : > { %v430_v34 = vsel %vm414_vm6, %v392_v20, %v422_v28  ;;  %435 = vst.msk [vmem:[%s737_s28] sm:$0xff] %vm434_vm2, %v426_v33  ;;  %v429_v37 = vsel %vm413_vm7, %v387_v25, %v421_v31 }
  0xdc   : > { %439 = vst.msk [vmem:[%s737_s28 + $0x20] sm:$0xff] %vm434_vm2, %v430_v34  ;;  %v433_v38 = vsel %vm417_vm8, %v407_v26, %v425_v32  ;;  %438 = vst.msk [vmem:[%s737_s28 + $0x18] sm:$0xff] %vm434_vm2, %v429_v37  ;;  %vm412_vm9 = vcmp.ge.f32.partialorder %v382_v35, 0.0  ;;  %v420_v39 = vmul.f32 0.1, %v382_v35  ;;  %vm416_vm10 = vcmp.ge.f32.partialorder %v402_v36, 0.0 }
  0xdd   : > { %442 = vst.msk [vmem:[%s737_s28 + $0x38] sm:$0xff] %vm434_vm2, %v433_v38  ;;  %v424_v40 = vmul.f32 0.1, %v402_v36 }
  0xde   : > { %v428_v41 = vsel %vm412_vm9, %v382_v35, %v420_v39 }
  0xdf   : > { %v432_v42 = vsel %vm416_vm10, %v402_v36, %v424_v40  ;;  %437 = vst.msk [vmem:[%s737_s28 + $0x10] sm:$0xff] %vm434_vm2, %v428_v41 }
  0xe0   : > { %441 = vst.msk [vmem:[%s737_s28 + $0x30] sm:$0xff] %vm434_vm2, %v432_v42 }
  0xe1 PF: > { %s13_s14 = sadd.s32 1, %s671_s14   ;;  %s768_s12 = smov %s667_s13 }
  0xe2   : > { %p10_p5 = scmp.ge.s32.totalorder %s13_s14, 4   ;;  %s769_s13 = smov %s771_s15 }
  0xe4   :  { %12 = sbr.rel (!%p10_p5) target bundleno = 2 (0x2), region = 68 }

</bundles_post_ra>
